<compile_context>
chip_gen: v7x
topology: tpu7x:2x2x1
jax: 0.10.0
libtpu: 0.0.40
codegen_flags: <defaults>
</compile_context>

<pallas_src>
import jax
import jax.numpy as jnp
from jax.experimental import pallas as pl
from jax.experimental.pallas import tpu as pltpu


_MiB = 1024 * 1024
_TARGET_BLOCK_BYTES = 4 * _MiB   # tile-size curve plateaus around here on all gens
_HARD_BLOCK_CAP = 6 * _MiB       # absolute per-block cap (double-buffered in+out ~24 MiB)
_MIN_GRID_STEPS = 8              # pipelining overlap + v7x 2-TC sharding


def _hswish_kernel(x_ref, o_ref):
    # hard-swish: x * relu6(x + 3) / 6
    x = x_ref[...].astype(jnp.float32)
    r6 = jnp.clip(x + 3.0, 0.0, 6.0)
    o_ref[...] = (x * r6 * (1.0 / 6.0)).astype(o_ref.dtype)


def _collapse_to_3d(shape):
    """Layout-preserving 3D view: merge leading dims, keep trailing two intact."""
    if len(shape) >= 3:
        lead = 1
        for d in shape[:-2]:
            lead *= d
        return (lead, shape[-2], shape[-1])
    return (1,) * (3 - len(shape)) + tuple(shape)  # () / (W,) / (H, W)


def _choose_blocks(b, h, w, itemsize):
    """Pick (block_b, block_h, block_w) for a (b, h, w) array."""
    sub = max(8, 32 // itemsize)          # sublane multiple: 8 f32 / 16 bf16 / 32 i8
    row_bytes = w * itemsize
    slice_bytes = h * row_bytes
    total_bytes = b * slice_bytes

    # Target ~4 MiB blocks, but shrink (down to ~1 MiB) so tensors larger than a
    # few MiB get >= _MIN_GRID_STEPS grid steps (megacore + DMA overlap).
    eff_target = _TARGET_BLOCK_BYTES
    if total_bytes > 2 * _MiB:
        eff_target = min(_TARGET_BLOCK_BYTES,
                         max(_MiB, total_bytes // _MIN_GRID_STEPS))

    if slice_bytes <= eff_target:
        block_h = h
        block_b = max(1, min(b, eff_target // slice_bytes))
    else:
        block_b = 1
        if h <= sub:
            block_h = h                    # full extent is always a legal block dim
        else:
            bh = (eff_target // max(row_bytes, 1)) // sub * sub
            block_h = min(h, max(sub, bh))

    # Fallback for huge trailing dims: tile the lane dim in multiples of 128.
    block_w = w
    if block_b * block_h * row_bytes > _HARD_BLOCK_CAP and w > 128:
        bw = (_HARD_BLOCK_CAP // max(block_b * block_h * itemsize, 1)) // 128 * 128
        block_w = min(w, max(128, bw))

    return block_b, block_h, block_w


def _vmem_limit_bytes():
    # Generation-aware scoped-VMEM budget: room for double-buffered 4-6 MiB in+out
    # blocks everywhere, but never near v7x's 64 MiB/TC physical ceiling.
    try:
        cap = pltpu.get_tpu_info().vmem_capacity_bytes
    except Exception:
        cap = 64 * _MiB
    return int(min(48 * _MiB, max(32 * _MiB, cap // 2)))


def hswish(x, *, donate=False):
    """Elementwise hard-swish (x * relu6(x + 3) / 6).  Accepts any shape.

    donate=True aliases the output onto the input buffer (memory-pressure win,
    not a bandwidth win); only use when the caller donates `x`.
    """
    orig_shape = x.shape
    dtype = x.dtype
    if x.size == 0:
        return x

    # Layout-preserving collapse: only leading dims merge, the trailing (tiled
    # (8,128)) dims are untouched -> these reshapes are bitcasts, no relayout
    # copies around the pallas_call.
    b, h, w = _collapse_to_3d(orig_shape)
    x3 = x.reshape(b, h, w)

    itemsize = jnp.dtype(dtype).itemsize
    block_b, block_h, block_w = _choose_blocks(b, h, w, itemsize)
    grid = (pl.cdiv(b, block_b), pl.cdiv(h, block_h), pl.cdiv(w, block_w))
    spec = pl.BlockSpec((block_b, block_h, block_w), lambda i, j, k: (i, j, k))

    out3 = pl.pallas_call(
        _hswish_kernel,
        out_shape=jax.ShapeDtypeStruct((b, h, w), dtype),
        grid_spec=pltpu.PrefetchScalarGridSpec(
            num_scalar_prefetch=0,
            grid=grid,
            in_specs=[spec],
            out_specs=spec,
        ),
        compiler_params=pltpu.CompilerParams(
            dimension_semantics=("parallel", "parallel", "parallel"),
            vmem_limit_bytes=_vmem_limit_bytes(),
        ),
        input_output_aliases=({0: 0} if donate else {}),
    )(x3)

    return out3.reshape(orig_shape)


if __name__ == "__main__":
    key = jax.random.PRNGKey(0)

    # NCHW input, same convention as the PyTorch module.
    x = jax.random.normal(key, (2, 4, 16, 16), dtype=jnp.float32) * 4.0
    out = jax.block_until_ready(hswish(x))
    ref = x * jnp.clip(x + 3.0, 0.0, 6.0) / 6.0
    assert out.shape == x.shape and out.dtype == x.dtype
    assert jnp.allclose(out, ref, atol=1e-6, rtol=1e-6)

    # Larger f32 case: exercises a multi-step grid (still small and fast).
    x2 = jax.random.normal(jax.random.PRNGKey(1), (4, 8, 128, 256), jnp.float32)
    out2 = jax.block_until_ready(hswish(x2))
    ref2 = x2 * jnp.clip(x2 + 3.0, 0.0, 6.0) / 6.0
    assert jnp.allclose(out2, ref2, atol=1e-6, rtol=1e-6)

    # bf16 path: kernel upcasts to f32 internally and casts back.
    xb = (jax.random.normal(jax.random.PRNGKey(2), (2, 4, 16, 16), jnp.float32)
          * 4.0).astype(jnp.bfloat16)
    outb = jax.block_until_ready(hswish(xb))
    xf = xb.astype(jnp.float32)
    refb = (xf * jnp.clip(xf + 3.0, 0.0, 6.0) / 6.0).astype(jnp.bfloat16)
    assert outb.dtype == jnp.bfloat16
    assert jnp.allclose(outb.astype(jnp.float32), refb.astype(jnp.float32),
                        atol=1e-2, rtol=1e-2)

    print("KERNEL_OK")
</pallas_src>

<mosaic_0001>
module attributes {stable_mosaic.version = 11 : i64} {
  func.func @_hswish_kernel(%arg0: i32, %arg1: i32, %arg2: i32, %arg3: memref<8x16x16xf32, #tpu.memory_space<vmem>>, %arg4: memref<8x16x16xf32, #tpu.memory_space<vmem>>) attributes {dimension_semantics = [#tpu.dimension_semantics<parallel>, #tpu.dimension_semantics<parallel>, #tpu.dimension_semantics<parallel>], iteration_bounds = array<i64: 1, 1, 1>, scalar_prefetch = 0 : i64, scratch_operands = 0 : i64, tpu.core_type = #tpu.core_type<tc>, window_params = [{transform_indices = @transform_0, window_bounds = array<i64: 8, 16, 16>}, {transform_indices = @transform_1, window_bounds = array<i64: 8, 16, 16>}]} {
    %c0 = arith.constant 0 : index
    %c0_0 = arith.constant 0 : index
    %c0_1 = arith.constant 0 : index
    %0 = vector.load %arg3[%c0, %c0_0, %c0_1] : memref<8x16x16xf32, #tpu.memory_space<vmem>>, vector<8x16x16xf32>
    %cst = arith.constant 3.000000e+00 : f32
    %1 = vector.broadcast %cst : f32 to vector<8x16x16xf32>
    %2 = arith.addf %0, %1 : vector<8x16x16xf32>
    %cst_2 = arith.constant 0.000000e+00 : f32
    %cst_3 = arith.constant 6.000000e+00 : f32
    %3 = vector.broadcast %cst_2 : f32 to vector<8x16x16xf32>
    %4 = arith.maximumf %3, %2 : vector<8x16x16xf32>
    %5 = vector.broadcast %cst_3 : f32 to vector<8x16x16xf32>
    %6 = arith.minimumf %5, %4 : vector<8x16x16xf32>
    %7 = arith.mulf %0, %6 : vector<8x16x16xf32>
    %cst_4 = arith.constant 0.166666672 : f32
    %8 = vector.broadcast %cst_4 : f32 to vector<8x16x16xf32>
    %9 = arith.mulf %7, %8 : vector<8x16x16xf32>
    %c0_5 = arith.constant 0 : index
    %c0_6 = arith.constant 0 : index
    %c0_7 = arith.constant 0 : index
    %10 = vector.load %arg4[%c0_5, %c0_6, %c0_7] : memref<8x16x16xf32, #tpu.memory_space<vmem>>, vector<8x16x16xf32>
    tpu.vector_store %arg4[%c0_5, %c0_6, %c0_7], %9 {strides = array<i32>} : memref<8x16x16xf32, #tpu.memory_space<vmem>>, vector<8x16x16xf32>,
    return
  }
  func.func @transform_0(%arg0: i32, %arg1: i32, %arg2: i32) -> (i32, i32, i32) {
    %c0_i32 = arith.constant 0 : i32
    return %arg0, %arg1, %arg2 : i32, i32, i32
  }
  func.func @transform_1(%arg0: i32, %arg1: i32, %arg2: i32) -> (i32, i32, i32) {
    %c0_i32 = arith.constant 0 : i32
    return %arg0, %arg1, %arg2 : i32, i32, i32
  }
}

</mosaic_0001>

<bundles_post_ra>
// kernel: tpu_custom_call.1
= control target key start
LH: loop header
LB: loop body
LE: loop exit
PB: predicated region body
PF: predicated region fallthrough
CT: control target
= control target key end

     0   :  { %6 = vsyncpa [#allocation3], 0  ;;  %s265_s0 = inlined_call_operand.hbm [shape: f32[8,16,16], index: 0, kind: input, shape index: {}]   ;;  %s266_s1 = inlined_call_operand.hbm [shape: f32[8,16,16], index: 1, kind: output, shape index: {}]  }
   0x1   :  { %7 = vsyncpa [#allocation4], 0  ;;  %s205_s6 = smov [#allocation2]   ;;  %s157_s10 = scalar_lea.hbm %s265_s0, 2048 }
   0x2   :  { %s13_s7 = sshll.u32 %s205_s6, 4  ;;  %p158_p0 = scmp.ne.s32.totalorder %s265_s0, %s157_s10  ;;  %s14_s7 = int_to_ptr.vmem [resolvable:$true] %s13_s7 }
   0x3   :  { %p161_p1 = scmp.lt.u32.totalorder %s157_s10, %s265_s0 }
   0x5   :  { %p163_p2 = pnand %p161_p1, %p158_p0 }
   0x7   :  { %166 = shalt.err (!%p163_p2)
}
   0x8   :  { %s167_s15 = scalar_lea.vmem %s14_s7, 2048  ;;  %p172_p4 = scmp.lt.s32.totalorder %s14_s7, %s14_s7 }
   0x9   :  { %p168_p3 = scmp.ne.s32.totalorder %s14_s7, %s167_s15  ;;  %p173_p5 = scmp.lt.s32.totalorder %s167_s15, %s167_s15 }
   0xb   :  { %p174_p6 = por %p173_p5, %p172_p4 }
   0xd   :  { %p175_p7 = pnand %p174_p6, %p168_p3 }
   0xf   :  { %178 = shalt.err (!%p175_p7)
}
  0x10   :  { %s206_s16 = smov 128   ;;  %s207_s17 = smov 8  }
  0x11   :  { %19 = dma.hbm_to_vmem [thread:$0]  %s265_s0, 2048, %s14_s7, [#allocation3], %s206_s16, %s206_s16, %s207_s17  }
  0x12   :  { %201 = dma.done.wait [#allocation3], 2048  }
  0x13   :  { %202 = vsyncadd [#allocation3], 4294965248  ;;  %v23_v0 = vld [vmem:[#allocation2] sm:$0xff]  ;;  %v24_v1 = vld [vmem:[#allocation2 + $0x8] sm:$0xff]  ;;  %vm119_vm0 = vcmask 130048   ;;  %s208_s0 = smov [#allocation5]  }
  0x14   :  { %v25_v2 = vld [vmem:[#allocation2 + $0x10] sm:$0xff]  ;;  %v39_v3 = vadd.f32 3.0, %v23_v0  ;;  %v40_v4 = vadd.f32 3.0, %v24_v1  ;;  %v26_v6 = vld [vmem:[#allocation2 + $0x18] sm:$0xff]  ;;  %v27_v7 = vld [vmem:[#allocation2 + $0x20] sm:$0xff]  ;;  %s141_s20 = sshll.u32 %s208_s0, 4  ;;  %s142_s20 = int_to_ptr.vmem [resolvable:$true] %s141_s20 }
  0x15   :  { %v41_v5 = vadd.f32 3.0, %v25_v2  ;;  %v28_v8 = vld [vmem:[#allocation2 + $0x28] sm:$0xff]  ;;  %v42_v9 = vadd.f32 3.0, %v26_v6  ;;  %v43_v10 = vadd.f32 3.0, %v27_v7  ;;  %v29_v12 = vld [vmem:[#allocation2 + $0x30] sm:$0xff]  ;;  %v30_v13 = vld [vmem:[#allocation2 + $0x38] sm:$0xff]  ;;  %p184_p9 = scmp.lt.s32.totalorder %s142_s20, %s142_s20 }
  0x16   :  { %v44_v11 = vadd.f32 3.0, %v28_v8  ;;  %v55_v14 = vmax.f32 %v39_v3, 0.0  ;;  %v56_v15 = vmax.f32 %v40_v4, 0.0  ;;  %v45_v17 = vadd.f32 3.0, %v29_v12  ;;  %v31_v30 = vld [vmem:[#allocation2 + $0x40] sm:$0xff]  ;;  %v32_v35 = vld [vmem:[#allocation2 + $0x48] sm:$0xff] }
  0x17   :  { %v57_v16 = vmax.f32 %v41_v5, 0.0  ;;  %v58_v18 = vmax.f32 %v42_v9, 0.0  ;;  %v59_v19 = vmax.f32 %v43_v10, 0.0  ;;  %v46_v21 = vadd.f32 3.0, %v30_v13  ;;  %v33_v36 = vld [vmem:[#allocation2 + $0x50] sm:$0xff]  ;;  %v34_v37 = vld [vmem:[#allocation2 + $0x58] sm:$0xff] }
  0x18   :  { %v60_v20 = vmax.f32 %v44_v11, 0.0  ;;  %v71_v22 = vmin.f32 %v55_v14, 6.0  ;;  %v72_v23 = vmin.f32 %v56_v15, 6.0  ;;  %v61_v25 = vmax.f32 %v45_v17, 0.0  ;;  %v35_v42 = vld [vmem:[#allocation2 + $0x60] sm:$0xff]  ;;  %v36_v43 = vld [vmem:[#allocation2 + $0x68] sm:$0xff] }
  0x19   :  { %v73_v24 = vmin.f32 %v57_v16, 6.0  ;;  %v74_v26 = vmin.f32 %v58_v18, 6.0  ;;  %v75_v27 = vmin.f32 %v59_v19, 6.0  ;;  %v62_v29 = vmax.f32 %v46_v21, 0.0  ;;  %v37_v44 = vld [vmem:[#allocation2 + $0x70] sm:$0xff]  ;;  %v38_v57 = vld [vmem:[#allocation2 + $0x78] sm:$0xff] }
  0x1a   :  { %v76_v28 = vmin.f32 %v60_v20, 6.0  ;;  %v87_v31 = vmul.f32 %v71_v22, %v23_v0  ;;  %v88_v32 = vmul.f32 %v72_v23, %v24_v1  ;;  %v77_v34 = vmin.f32 %v61_v25, 6.0  ;;  %s179_s21 = scalar_lea.vmem %s142_s20, 2048 }
  0x1b   :  { %v89_v33 = vmul.f32 %v73_v24, %v25_v2  ;;  %v90_v38 = vmul.f32 %v74_v26, %v26_v6  ;;  %v91_v39 = vmul.f32 %v75_v27, %v27_v7  ;;  %v78_v41 = vmin.f32 %v62_v29, 6.0  ;;  %p180_p8 = scmp.ne.s32.totalorder %s142_s20, %s179_s21  ;;  %p185_p10 = scmp.lt.s32.totalorder %s179_s21, %s179_s21 }
  0x1c   :  { %v92_v40 = vmul.f32 %v76_v28, %v28_v8  ;;  %v103_v45 = vmul.f32 0.16666667, %v87_v31  ;;  %v104_v46 = vmul.f32 0.16666667, %v88_v32  ;;  %v93_v48 = vmul.f32 %v77_v34, %v29_v12 }
  0x1d   :  { %v105_v47 = vmul.f32 0.16666667, %v89_v33  ;;  %v106_v49 = vmul.f32 0.16666667, %v90_v38  ;;  %v107_v50 = vmul.f32 0.16666667, %v91_v39  ;;  %v94_v52 = vmul.f32 %v78_v41, %v30_v13  ;;  %p186_p11 = por %p185_p10, %p184_p9 }
  0x1e   :  { %v108_v51 = vmul.f32 0.16666667, %v92_v40  ;;  %120 = vst.msk [vmem:[#allocation5] sm:$0xff] %vm119_vm0, %v103_v45  ;;  %121 = vst.msk [vmem:[#allocation5 + $0x8] sm:$0xff] %vm119_vm0, %v104_v46  ;;  %v109_v53 = vmul.f32 0.16666667, %v93_v48 }
  0x1f   :  { %122 = vst.msk [vmem:[#allocation5 + $0x10] sm:$0xff] %vm119_vm0, %v105_v47  ;;  %v47_v54 = vadd.f32 3.0, %v31_v30  ;;  %v48_v55 = vadd.f32 3.0, %v32_v35  ;;  %v49_v56 = vadd.f32 3.0, %v33_v36  ;;  %123 = vst.msk [vmem:[#allocation5 + $0x18] sm:$0xff] %vm119_vm0, %v106_v49  ;;  %v50_v59 = vadd.f32 3.0, %v34_v37  ;;  %p187_p12 = pnand %p186_p11, %p180_p8 }
  0x20   :  { %124 = vst.msk [vmem:[#allocation5 + $0x20] sm:$0xff] %vm119_vm0, %v107_v50  ;;  %125 = vst.msk [vmem:[#allocation5 + $0x28] sm:$0xff] %vm119_vm0, %v108_v51  ;;  %v110_v58 = vmul.f32 0.16666667, %v94_v52  ;;  %v51_v60 = vadd.f32 3.0, %v35_v42  ;;  %v52_v61 = vadd.f32 3.0, %v36_v43 }
  0x21   :  { %126 = vst.msk [vmem:[#allocation5 + $0x30] sm:$0xff] %vm119_vm0, %v109_v53  ;;  %v63_v62 = vmax.f32 %v47_v54, 0.0  ;;  %v64_v63 = vmax.f32 %v48_v55, 0.0  ;;  %v65_v0 = vmax.f32 %v49_v56, 0.0  ;;  %v53_v1 = vadd.f32 3.0, %v37_v44 }
  0x22   :  { %127 = vst.msk [vmem:[#allocation5 + $0x38] sm:$0xff] %vm119_vm0, %v110_v58  ;;  %v66_v2 = vmax.f32 %v50_v59, 0.0  ;;  %v67_v3 = vmax.f32 %v51_v60, 0.0  ;;  %v68_v4 = vmax.f32 %v52_v61, 0.0  ;;  %v54_v5 = vadd.f32 3.0, %v38_v57 }
  0x23   :  { %v79_v6 = vmin.f32 %v63_v62, 6.0  ;;  %v80_v7 = vmin.f32 %v64_v63, 6.0  ;;  %v81_v8 = vmin.f32 %v65_v0, 6.0  ;;  %v69_v9 = vmax.f32 %v53_v1, 0.0 }
  0x24   :  { %v82_v10 = vmin.f32 %v66_v2, 6.0  ;;  %v83_v11 = vmin.f32 %v67_v3, 6.0  ;;  %v84_v12 = vmin.f32 %v68_v4, 6.0  ;;  %v70_v13 = vmax.f32 %v54_v5, 0.0 }
  0x25   :  { %v95_v14 = vmul.f32 %v79_v6, %v31_v30  ;;  %v96_v15 = vmul.f32 %v80_v7, %v32_v35  ;;  %v97_v16 = vmul.f32 %v81_v8, %v33_v36  ;;  %v85_v17 = vmin.f32 %v69_v9, 6.0 }
  0x26   :  { %v98_v18 = vmul.f32 %v82_v10, %v34_v37  ;;  %v99_v19 = vmul.f32 %v83_v11, %v35_v42  ;;  %v100_v20 = vmul.f32 %v84_v12, %v36_v43  ;;  %v86_v21 = vmin.f32 %v70_v13, 6.0 }
  0x27   :  { %v111_v22 = vmul.f32 0.16666667, %v95_v14  ;;  %v112_v23 = vmul.f32 0.16666667, %v96_v15  ;;  %v113_v24 = vmul.f32 0.16666667, %v97_v16  ;;  %v101_v25 = vmul.f32 %v85_v17, %v37_v44 }
  0x28   :  { %v114_v26 = vmul.f32 0.16666667, %v98_v18  ;;  %v115_v27 = vmul.f32 0.16666667, %v99_v19  ;;  %v116_v28 = vmul.f32 0.16666667, %v100_v20  ;;  %v102_v29 = vmul.f32 %v86_v21, %v38_v57 }
  0x29   :  { %128 = vst.msk [vmem:[#allocation5 + $0x40] sm:$0xff] %vm119_vm0, %v111_v22  ;;  %129 = vst.msk [vmem:[#allocation5 + $0x48] sm:$0xff] %vm119_vm0, %v112_v23  ;;  %v117_v30 = vmul.f32 0.16666667, %v101_v25 }
  0x2a   :  { %130 = vst.msk [vmem:[#allocation5 + $0x50] sm:$0xff] %vm119_vm0, %v113_v24  ;;  %131 = vst.msk [vmem:[#allocation5 + $0x58] sm:$0xff] %vm119_vm0, %v114_v26  ;;  %v118_v31 = vmul.f32 0.16666667, %v102_v29 }
  0x2b   :  { %132 = vst.msk [vmem:[#allocation5 + $0x60] sm:$0xff] %vm119_vm0, %v115_v27  ;;  %133 = vst.msk [vmem:[#allocation5 + $0x68] sm:$0xff] %vm119_vm0, %v116_v28 }
  0x2c   :  { %134 = vst.msk [vmem:[#allocation5 + $0x70] sm:$0xff] %vm119_vm0, %v117_v30  ;;  %135 = vst.msk [vmem:[#allocation5 + $0x78] sm:$0xff] %vm119_vm0, %v118_v31 }
  0x2d   :  { %190 = shalt.err (!%p187_p12)
}
  0x2e   :  { %s191_s24 = scalar_lea.hbm %s266_s1, 2048 }
  0x2f   :  { %p192_p13 = scmp.ne.s32.totalorder %s266_s1, %s191_s24  ;;  %p195_p0 = scmp.lt.u32.totalorder %s191_s24, %s266_s1 }
  0x31   :  { %p197_p1 = pnand %p195_p0, %p192_p13 }
  0x33   :  { %200 = shalt.err (!%p197_p1)
}
  0x34   :  { %147 = dma.vmem_to_hbm [thread:$0]  %s142_s20, 2048, %s266_s1, [#allocation4], %s206_s16, %s206_s16, %s207_s17  }
  0x35   :  { %203 = dma.done.wait [#allocation4], 2048  }
  0x36   :  { %204 = vsyncadd [#allocation4], 4294965248 }
  0x37   :  { %151 = vsyncpa [#allocation3], 1 }
  0x38   :  { %152 = vsyncpa [#allocation4], 1 }

</bundles_post_ra>
